<compile_context>
chip_gen: v5e
topology: v5e:2x2
jax: 0.10.0
libtpu: 0.0.40
codegen_flags: <defaults>
</compile_context>

<pallas_src>
import numpy as np
import jax
import jax.numpy as jnp
from jax.experimental import pallas as pl
from jax.experimental.pallas import tpu as pltpu


def make_mask_weight(kernel_size: int) -> jnp.ndarray:
    """Deterministic init identical to the module's __init__ (shape (K, K))."""
    kx = np.arange(0, kernel_size, 1)
    ky = np.arange(0, kernel_size, 1)
    kx, ky = np.meshgrid(kx, ky)
    kernel = np.stack([kx, ky], axis=0)                    # (2, K, K)
    padding = kernel_size // 2
    dist = np.max(np.abs(padding - kernel), axis=0)        # (K, K)
    weight = 1.0 - dist.astype(np.float32) / (padding + 1)
    return jnp.asarray(weight, dtype=jnp.float32)


def _pick_batch_block(n: int, flat_len: int, itemsize: int) -> int:
    """Batch elements per grid step: large enough to amortize the ~0.35us
    per-step pipeline overhead, small enough that the double-buffered in/out
    blocks stay well inside VMEM on every TPU generation."""
    budget = 8 * 1024 * 1024                      # ~8 MiB of input per step
    nb = max(1, budget // max(1, flat_len * itemsize))
    if nb >= n:
        return n                                  # whole batch in one step
    nb = (min(nb, n) // 8) * 8                    # sublane dim: multiple of 8
    while nb >= 8 and n % nb != 0:                # keep every grid step full
        nb -= 8
    return nb if nb >= 8 else n


def _make_kernel(nb: int, h: int, w: int, k: int):
    l = h * w
    p = k // 2

    def kernel(w_ref, cid_ref, x_ref, o_ref):
        # w_ref:   (K, K) f32 weights in SMEM (scalar reads)
        # cid_ref: (1, L) int32 column index (f % W), precomputed in the wrapper
        # x_ref:   (Nb, L) flattened images, caller dtype
        # o_ref:   (Nb, L) output, caller dtype
        x = x_ref[...].astype(jnp.float32)
        flat = jax.lax.broadcasted_iota(jnp.int32, (nb, l), 1)     # f = r*W + c
        col = jnp.broadcast_to(cid_ref[...], (nb, l))              # c = f % W

        # Column-validity masks, hoisted out of the tap loop (one per dj).
        col_masks = []
        for j in range(k):
            dj = j - p
            if dj < 0:
                col_masks.append(col >= -dj)          # need c + dj >= 0
            elif dj > 0:
                col_masks.append(col < (w - dj))      # need c + dj < W
            else:
                col_masks.append(None)

        acc = jnp.zeros((nb, l), jnp.float32)
        for i in range(k):
            di = i - p
            if di == 0:
                xv = x
            else:
                # Vertical tap: xv[f] = x[f + di*W] via circular lane roll,
                # then zero the rows that wrapped past the image border.
                xv = pltpu.roll(x, shift=(-di * w) % l, axis=1)
                if di < 0:
                    rm = flat >= (-di) * w            # need r + di >= 0
                else:
                    rm = flat < (h - di) * w          # need r + di < H
                xv = jnp.where(rm, xv, 0.0)
            for j in range(k):
                dj = j - p
                # Horizontal tap: xh[f] = xv[f + dj] via circular lane roll.
                xh = xv if dj == 0 else pltpu.roll(xv, shift=(-dj) % l, axis=1)
                cm = col_masks[j]
                if cm is not None:
                    xh = jnp.where(cm, xh, 0.0)       # zero c + dj outside image
                acc = acc + w_ref[i, j] * xh

        y = jnp.clip(acc, 0.0, 1.0) * 0.5 + 0.5
        o_ref[...] = y.astype(o_ref.dtype)

    return kernel


def conv_mask_2d_trainable(x: jnp.ndarray, weight: jnp.ndarray) -> jnp.ndarray:
    """x: (N, 1, H, W); weight: (K, K) float32. Returns (N, 1, H, W) in x.dtype."""
    n, c, h, w = x.shape
    assert c == 1, "Conv_Mask_2D_trainable uses a single-channel conv"
    k = int(weight.shape[0])
    assert k % 2 == 1, "expects odd kernel_size (same-size output)"
    l = h * w

    itemsize = jnp.dtype(x.dtype).itemsize
    nb = _pick_batch_block(n, l, itemsize)
    grid = (n // nb,)

    # Free reshapes (contiguous collapse): no extra HBM pass, lane-dense layout.
    x2 = x.reshape(n, l)
    col_id = jnp.asarray(np.tile(np.arange(w, dtype=np.int32), h)[None, :])  # (1, L)
    w32 = weight.astype(jnp.float32)

    # Explicit VMEM budget: double-buffered in/out blocks + in-kernel f32 temporaries.
    vmem_need = (2 * 2 * nb * l * itemsize      # in + out blocks, double-buffered
                 + 8 * nb * l * 4               # x / xv / xh / acc / iota / masks
                 + 2 * l * 4 + (2 << 20))
    vmem_limit = int(min(max(vmem_need, 32 << 20), 64 << 20))

    out = pl.pallas_call(
        _make_kernel(nb, h, w, k),
        out_shape=jax.ShapeDtypeStruct((n, l), x.dtype),
        grid=grid,
        in_specs=[
            pl.BlockSpec(memory_space=pltpu.SMEM),        # (K, K) weights
            pl.BlockSpec((1, l), lambda b: (0, 0)),       # column-index row (constant block)
            pl.BlockSpec((nb, l), lambda b: (b, 0)),      # batch block of flattened images
        ],
        out_specs=pl.BlockSpec((nb, l), lambda b: (b, 0)),
        compiler_params=pltpu.CompilerParams(
            dimension_semantics=("parallel",),
            vmem_limit_bytes=vmem_limit,
        ),
    )(w32, col_id, x2)

    return out.reshape(n, 1, h, w)


def _reference(x, weight):
    """Pure-JAX reference (lax conv) for correctness checking."""
    k = weight.shape[0]
    pad = k // 2
    w = weight[None, None].astype(jnp.float32)  # (O=1, I=1, K, K)
    y = jax.lax.conv_general_dilated(
        x.astype(jnp.float32), w,
        window_strides=(1, 1),
        padding=[(pad, pad), (pad, pad)],
        dimension_numbers=("NCHW", "OIHW", "NCHW"),
    )
    return jnp.clip(y, 0.0, 1.0) * 0.5 + 0.5


if __name__ == "__main__":
    kernel_size = 5
    weight = make_mask_weight(kernel_size)

    key = jax.random.PRNGKey(0)
    x = jax.random.uniform(key, (2, 1, 16, 16), dtype=jnp.float32)

    fn = jax.jit(conv_mask_2d_trainable)
    out = jax.block_until_ready(fn(x, weight))

    ref = _reference(x, weight)
    assert out.shape == (2, 1, 16, 16)
    assert out.dtype == x.dtype
    np.testing.assert_allclose(np.asarray(out), np.asarray(ref), rtol=1e-5, atol=1e-5)

    print("KERNEL_OK")
</pallas_src>

<mosaic_0001>
module attributes {stable_mosaic.version = 11 : i64} {
  func.func @kernel(%arg0: i32, %arg1: memref<5x5xf32, #tpu.memory_space<smem>>, %arg2: memref<1x256xi32, #tpu.memory_space<vmem>>, %arg3: memref<2x256xf32, #tpu.memory_space<vmem>>, %arg4: memref<2x256xf32, #tpu.memory_space<vmem>>) attributes {dimension_semantics = [#tpu.dimension_semantics<parallel>], iteration_bounds = array<i64: 1>, scalar_prefetch = 0 : i64, scratch_operands = 0 : i64, tpu.core_type = #tpu.core_type<tc>, window_params = [{transform_indices = @transform_0, window_bounds = array<i64: 5, 5>}, {pipeline_mode = #tpu.pipeline_mode<synchronous>, transform_indices = @transform_1, window_bounds = array<i64: 1, 256>}, {transform_indices = @transform_2, window_bounds = array<i64: 2, 256>}, {transform_indices = @transform_3, window_bounds = array<i64: 2, 256>}]} {
    %c0 = arith.constant 0 : index
    %c0_0 = arith.constant 0 : index
    %0 = vector.load %arg3[%c0, %c0_0] : memref<2x256xf32, #tpu.memory_space<vmem>>, vector<2x256xf32>
    %1 = tpu.iota {dimensions = array<i32: 1>} : vector<2x256xi32>
    %c0_1 = arith.constant 0 : index
    %c0_2 = arith.constant 0 : index
    %2 = vector.load %arg2[%c0_1, %c0_2] : memref<1x256xi32, #tpu.memory_space<vmem>>, vector<1x256xi32>
    %3 = vector.shape_cast %2 : vector<1x256xi32> to vector<1x256xi32>
    %4 = vector.broadcast %3 : vector<1x256xi32> to vector<2x256xi32>
    %c2_i32 = arith.constant 2 : i32
    %5 = vector.broadcast %c2_i32 : i32 to vector<2x256xi32>
    %6 = arith.cmpi sge, %4, %5 : vector<2x256xi32>
    %c1_i32 = arith.constant 1 : i32
    %7 = vector.broadcast %c1_i32 : i32 to vector<2x256xi32>
    %8 = arith.cmpi sge, %4, %7 : vector<2x256xi32>
    %c15_i32 = arith.constant 15 : i32
    %9 = vector.broadcast %c15_i32 : i32 to vector<2x256xi32>
    %10 = arith.cmpi slt, %4, %9 : vector<2x256xi32>
    %c14_i32 = arith.constant 14 : i32
    %11 = vector.broadcast %c14_i32 : i32 to vector<2x256xi32>
    %12 = arith.cmpi slt, %4, %11 : vector<2x256xi32>
    %cst = arith.constant 0.000000e+00 : f32
    %13 = vector.broadcast %cst : f32 to vector<2x256xf32>
    %c32_i32 = arith.constant 32 : i32
    %14 = tpu.dynamic_rotate %0 by %c32_i32 dim 1 : vector<2x256xf32>, i32 -> vector<2x256xf32>
    %c32_i32_3 = arith.constant 32 : i32
    %15 = vector.broadcast %c32_i32_3 : i32 to vector<2x256xi32>
    %16 = arith.cmpi sge, %1, %15 : vector<2x256xi32>
    %cst_4 = arith.constant 0.000000e+00 : f32
    %17 = vector.broadcast %cst_4 : f32 to vector<2x256xf32>
    %18 = arith.select %16, %14, %17 : vector<2x256xi1>, vector<2x256xf32>
    %c2_i32_5 = arith.constant 2 : i32
    %19 = tpu.dynamic_rotate %18 by %c2_i32_5 dim 1 : vector<2x256xf32>, i32 -> vector<2x256xf32>
    %cst_6 = arith.constant 0.000000e+00 : f32
    %20 = vector.broadcast %cst_6 : f32 to vector<2x256xf32>
    %21 = arith.select %6, %19, %20 : vector<2x256xi1>, vector<2x256xf32>
    %c0_7 = arith.constant 0 : index
    %c0_8 = arith.constant 0 : index
    %22 = memref.load %arg1[%c0_7, %c0_8] : memref<5x5xf32, #tpu.memory_space<smem>>
    %23 = vector.broadcast %22 : f32 to vector<2x256xf32>
    %24 = arith.mulf %23, %21 : vector<2x256xf32>
    %25 = arith.addf %13, %24 : vector<2x256xf32>
    %c1_i32_9 = arith.constant 1 : i32
    %26 = tpu.dynamic_rotate %18 by %c1_i32_9 dim 1 : vector<2x256xf32>, i32 -> vector<2x256xf32>
    %cst_10 = arith.constant 0.000000e+00 : f32
    %27 = vector.broadcast %cst_10 : f32 to vector<2x256xf32>
    %28 = arith.select %8, %26, %27 : vector<2x256xi1>, vector<2x256xf32>
    %c0_11 = arith.constant 0 : index
    %c1 = arith.constant 1 : index
    %29 = memref.load %arg1[%c0_11, %c1] : memref<5x5xf32, #tpu.memory_space<smem>>
    %30 = vector.broadcast %29 : f32 to vector<2x256xf32>
    %31 = arith.mulf %30, %28 : vector<2x256xf32>
    %32 = arith.addf %25, %31 : vector<2x256xf32>
    %c0_12 = arith.constant 0 : index
    %c2 = arith.constant 2 : index
    %33 = memref.load %arg1[%c0_12, %c2] : memref<5x5xf32, #tpu.memory_space<smem>>
    %34 = vector.broadcast %33 : f32 to vector<2x256xf32>
    %35 = arith.mulf %34, %18 : vector<2x256xf32>
    %36 = arith.addf %32, %35 : vector<2x256xf32>
    %c255_i32 = arith.constant 255 : i32
    %37 = tpu.dynamic_rotate %18 by %c255_i32 dim 1 : vector<2x256xf32>, i32 -> vector<2x256xf32>
    %cst_13 = arith.constant 0.000000e+00 : f32
    %38 = vector.broadcast %cst_13 : f32 to vector<2x256xf32>
    %39 = arith.select %10, %37, %38 : vector<2x256xi1>, vector<2x256xf32>
    %c0_14 = arith.constant 0 : index
    %c3 = arith.constant 3 : index
    %40 = memref.load %arg1[%c0_14, %c3] : memref<5x5xf32, #tpu.memory_space<smem>>
    %41 = vector.broadcast %40 : f32 to vector<2x256xf32>
    %42 = arith.mulf %41, %39 : vector<2x256xf32>
    %43 = arith.addf %36, %42 : vector<2x256xf32>
    %c254_i32 = arith.constant 254 : i32
    %44 = tpu.dynamic_rotate %18 by %c254_i32 dim 1 : vector<2x256xf32>, i32 -> vector<2x256xf32>
    %cst_15 = arith.constant 0.000000e+00 : f32
    %45 = vector.broadcast %cst_15 : f32 to vector<2x256xf32>
    %46 = arith.select %12, %44, %45 : vector<2x256xi1>, vector<2x256xf32>
    %c0_16 = arith.constant 0 : index
    %c4 = arith.constant 4 : index
    %47 = memref.load %arg1[%c0_16, %c4] : memref<5x5xf32, #tpu.memory_space<smem>>
    %48 = vector.broadcast %47 : f32 to vector<2x256xf32>
    %49 = arith.mulf %48, %46 : vector<2x256xf32>
    %50 = arith.addf %43, %49 : vector<2x256xf32>
    %c16_i32 = arith.constant 16 : i32
    %51 = tpu.dynamic_rotate %0 by %c16_i32 dim 1 : vector<2x256xf32>, i32 -> vector<2x256xf32>
    %c16_i32_17 = arith.constant 16 : i32
    %52 = vector.broadcast %c16_i32_17 : i32 to vector<2x256xi32>
    %53 = arith.cmpi sge, %1, %52 : vector<2x256xi32>
    %cst_18 = arith.constant 0.000000e+00 : f32
    %54 = vector.broadcast %cst_18 : f32 to vector<2x256xf32>
    %55 = arith.select %53, %51, %54 : vector<2x256xi1>, vector<2x256xf32>
    %c2_i32_19 = arith.constant 2 : i32
    %56 = tpu.dynamic_rotate %55 by %c2_i32_19 dim 1 : vector<2x256xf32>, i32 -> vector<2x256xf32>
    %cst_20 = arith.constant 0.000000e+00 : f32
    %57 = vector.broadcast %cst_20 : f32 to vector<2x256xf32>
    %58 = arith.select %6, %56, %57 : vector<2x256xi1>, vector<2x256xf32>
    %c1_21 = arith.constant 1 : index
    %c0_22 = arith.constant 0 : index
    %59 = memref.load %arg1[%c1_21, %c0_22] : memref<5x5xf32, #tpu.memory_space<smem>>
    %60 = vector.broadcast %59 : f32 to vector<2x256xf32>
    %61 = arith.mulf %60, %58 : vector<2x256xf32>
    %62 = arith.addf %50, %61 : vector<2x256xf32>
    %c1_i32_23 = arith.constant 1 : i32
    %63 = tpu.dynamic_rotate %55 by %c1_i32_23 dim 1 : vector<2x256xf32>, i32 -> vector<2x256xf32>
    %cst_24 = arith.constant 0.000000e+00 : f32
    %64 = vector.broadcast %cst_24 : f32 to vector<2x256xf32>
    %65 = arith.select %8, %63, %64 : vector<2x256xi1>, vector<2x256xf32>
    %c1_25 = arith.constant 1 : index
    %c1_26 = arith.constant 1 : index
    %66 = memref.load %arg1[%c1_25, %c1_26] : memref<5x5xf32, #tpu.memory_space<smem>>
    %67 = vector.broadcast %66 : f32 to vector<2x256xf32>
    %68 = arith.mulf %67, %65 : vector<2x256xf32>
    %69 = arith.addf %62, %68 : vector<2x256xf32>
    %c1_27 = arith.constant 1 : index
    %c2_28 = arith.constant 2 : index
    %70 = memref.load %arg1[%c1_27, %c2_28] : memref<5x5xf32, #tpu.memory_space<smem>>
    %71 = vector.broadcast %70 : f32 to vector<2x256xf32>
    %72 = arith.mulf %71, %55 : vector<2x256xf32>
    %73 = arith.addf %69, %72 : vector<2x256xf32>
    %c255_i32_29 = arith.constant 255 : i32
    %74 = tpu.dynamic_rotate %55 by %c255_i32_29 dim 1 : vector<2x256xf32>, i32 -> vector<2x256xf32>
    %cst_30 = arith.constant 0.000000e+00 : f32
    %75 = vector.broadcast %cst_30 : f32 to vector<2x256xf32>
    %76 = arith.select %10, %74, %75 : vector<2x256xi1>, vector<2x256xf32>
    %c1_31 = arith.constant 1 : index
    %c3_32 = arith.constant 3 : index
    %77 = memref.load %arg1[%c1_31, %c3_32] : memref<5x5xf32, #tpu.memory_space<smem>>
    %78 = vector.broadcast %77 : f32 to vector<2x256xf32>
    %79 = arith.mulf %78, %76 : vector<2x256xf32>
    %80 = arith.addf %73, %79 : vector<2x256xf32>
    %c254_i32_33 = arith.constant 254 : i32
    %81 = tpu.dynamic_rotate %55 by %c254_i32_33 dim 1 : vector<2x256xf32>, i32 -> vector<2x256xf32>
    %cst_34 = arith.constant 0.000000e+00 : f32
    %82 = vector.broadcast %cst_34 : f32 to vector<2x256xf32>
    %83 = arith.select %12, %81, %82 : vector<2x256xi1>, vector<2x256xf32>
    %c1_35 = arith.constant 1 : index
    %c4_36 = arith.constant 4 : index
    %84 = memref.load %arg1[%c1_35, %c4_36] : memref<5x5xf32, #tpu.memory_space<smem>>
    %85 = vector.broadcast %84 : f32 to vector<2x256xf32>
    %86 = arith.mulf %85, %83 : vector<2x256xf32>
    %87 = arith.addf %80, %86 : vector<2x256xf32>
    %c2_i32_37 = arith.constant 2 : i32
    %88 = tpu.dynamic_rotate %0 by %c2_i32_37 dim 1 : vector<2x256xf32>, i32 -> vector<2x256xf32>
    %cst_38 = arith.constant 0.000000e+00 : f32
    %89 = vector.broadcast %cst_38 : f32 to vector<2x256xf32>
    %90 = arith.select %6, %88, %89 : vector<2x256xi1>, vector<2x256xf32>
    %c2_39 = arith.constant 2 : index
    %c0_40 = arith.constant 0 : index
    %91 = memref.load %arg1[%c2_39, %c0_40] : memref<5x5xf32, #tpu.memory_space<smem>>
    %92 = vector.broadcast %91 : f32 to vector<2x256xf32>
    %93 = arith.mulf %92, %90 : vector<2x256xf32>
    %94 = arith.addf %87, %93 : vector<2x256xf32>
    %c1_i32_41 = arith.constant 1 : i32
    %95 = tpu.dynamic_rotate %0 by %c1_i32_41 dim 1 : vector<2x256xf32>, i32 -> vector<2x256xf32>
    %cst_42 = arith.constant 0.000000e+00 : f32
    %96 = vector.broadcast %cst_42 : f32 to vector<2x256xf32>
    %97 = arith.select %8, %95, %96 : vector<2x256xi1>, vector<2x256xf32>
    %c2_43 = arith.constant 2 : index
    %c1_44 = arith.constant 1 : index
    %98 = memref.load %arg1[%c2_43, %c1_44] : memref<5x5xf32, #tpu.memory_space<smem>>
    %99 = vector.broadcast %98 : f32 to vector<2x256xf32>
    %100 = arith.mulf %99, %97 : vector<2x256xf32>
    %101 = arith.addf %94, %100 : vector<2x256xf32>
    %c2_45 = arith.constant 2 : index
    %c2_46 = arith.constant 2 : index
    %102 = memref.load %arg1[%c2_45, %c2_46] : memref<5x5xf32, #tpu.memory_space<smem>>
    %103 = vector.broadcast %102 : f32 to vector<2x256xf32>
    %104 = arith.mulf %103, %0 : vector<2x256xf32>
    %105 = arith.addf %101, %104 : vector<2x256xf32>
    %c255_i32_47 = arith.constant 255 : i32
    %106 = tpu.dynamic_rotate %0 by %c255_i32_47 dim 1 : vector<2x256xf32>, i32 -> vector<2x256xf32>
    %cst_48 = arith.constant 0.000000e+00 : f32
    %107 = vector.broadcast %cst_48 : f32 to vector<2x256xf32>
    %108 = arith.select %10, %106, %107 : vector<2x256xi1>, vector<2x256xf32>
    %c2_49 = arith.constant 2 : index
    %c3_50 = arith.constant 3 : index
    %109 = memref.load %arg1[%c2_49, %c3_50] : memref<5x5xf32, #tpu.memory_space<smem>>
    %110 = vector.broadcast %109 : f32 to vector<2x256xf32>
    %111 = arith.mulf %110, %108 : vector<2x256xf32>
    %112 = arith.addf %105, %111 : vector<2x256xf32>
    %c254_i32_51 = arith.constant 254 : i32
    %113 = tpu.dynamic_rotate %0 by %c254_i32_51 dim 1 : vector<2x256xf32>, i32 -> vector<2x256xf32>
    %cst_52 = arith.constant 0.000000e+00 : f32
    %114 = vector.broadcast %cst_52 : f32 to vector<2x256xf32>
    %115 = arith.select %12, %113, %114 : vector<2x256xi1>, vector<2x256xf32>
    %c2_53 = arith.constant 2 : index
    %c4_54 = arith.constant 4 : index
    %116 = memref.load %arg1[%c2_53, %c4_54] : memref<5x5xf32, #tpu.memory_space<smem>>
    %117 = vector.broadcast %116 : f32 to vector<2x256xf32>
    %118 = arith.mulf %117, %115 : vector<2x256xf32>
    %119 = arith.addf %112, %118 : vector<2x256xf32>
    %c240_i32 = arith.constant 240 : i32
    %120 = tpu.dynamic_rotate %0 by %c240_i32 dim 1 : vector<2x256xf32>, i32 -> vector<2x256xf32>
    %c240_i32_55 = arith.constant 240 : i32
    %121 = vector.broadcast %c240_i32_55 : i32 to vector<2x256xi32>
    %122 = arith.cmpi slt, %1, %121 : vector<2x256xi32>
    %cst_56 = arith.constant 0.000000e+00 : f32
    %123 = vector.broadcast %cst_56 : f32 to vector<2x256xf32>
    %124 = arith.select %122, %120, %123 : vector<2x256xi1>, vector<2x256xf32>
    %c2_i32_57 = arith.constant 2 : i32
    %125 = tpu.dynamic_rotate %124 by %c2_i32_57 dim 1 : vector<2x256xf32>, i32 -> vector<2x256xf32>
    %cst_58 = arith.constant 0.000000e+00 : f32
    %126 = vector.broadcast %cst_58 : f32 to vector<2x256xf32>
    %127 = arith.select %6, %125, %126 : vector<2x256xi1>, vector<2x256xf32>
    %c3_59 = arith.constant 3 : index
    %c0_60 = arith.constant 0 : index
    %128 = memref.load %arg1[%c3_59, %c0_60] : memref<5x5xf32, #tpu.memory_space<smem>>
    %129 = vector.broadcast %128 : f32 to vector<2x256xf32>
    %130 = arith.mulf %129, %127 : vector<2x256xf32>
    %131 = arith.addf %119, %130 : vector<2x256xf32>
    %c1_i32_61 = arith.constant 1 : i32
    %132 = tpu.dynamic_rotate %124 by %c1_i32_61 dim 1 : vector<2x256xf32>, i32 -> vector<2x256xf32>
    %cst_62 = arith.constant 0.000000e+00 : f32
    %133 = vector.broadcast %cst_62 : f32 to vector<2x256xf32>
    %134 = arith.select %8, %132, %133 : vector<2x256xi1>, vector<2x256xf32>
    %c3_63 = arith.constant 3 : index
    %c1_64 = arith.constant 1 : index
    %135 = memref.load %arg1[%c3_63, %c1_64] : memref<5x5xf32, #tpu.memory_space<smem>>
    %136 = vector.broadcast %135 : f32 to vector<2x256xf32>
    %137 = arith.mulf %136, %134 : vector<2x256xf32>
    %138 = arith.addf %131, %137 : vector<2x256xf32>
    %c3_65 = arith.constant 3 : index
    %c2_66 = arith.constant 2 : index
    %139 = memref.load %arg1[%c3_65, %c2_66] : memref<5x5xf32, #tpu.memory_space<smem>>
    %140 = vector.broadcast %139 : f32 to vector<2x256xf32>
    %141 = arith.mulf %140, %124 : vector<2x256xf32>
    %142 = arith.addf %138, %141 : vector<2x256xf32>
    %c255_i32_67 = arith.constant 255 : i32
    %143 = tpu.dynamic_rotate %124 by %c255_i32_67 dim 1 : vector<2x256xf32>, i32 -> vector<2x256xf32>
    %cst_68 = arith.constant 0.000000e+00 : f32
    %144 = vector.broadcast %cst_68 : f32 to vector<2x256xf32>
    %145 = arith.select %10, %143, %144 : vector<2x256xi1>, vector<2x256xf32>
    %c3_69 = arith.constant 3 : index
    %c3_70 = arith.constant 3 : index
    %146 = memref.load %arg1[%c3_69, %c3_70] : memref<5x5xf32, #tpu.memory_space<smem>>
    %147 = vector.broadcast %146 : f32 to vector<2x256xf32>
    %148 = arith.mulf %147, %145 : vector<2x256xf32>
    %149 = arith.addf %142, %148 : vector<2x256xf32>
    %c254_i32_71 = arith.constant 254 : i32
    %150 = tpu.dynamic_rotate %124 by %c254_i32_71 dim 1 : vector<2x256xf32>, i32 -> vector<2x256xf32>
    %cst_72 = arith.constant 0.000000e+00 : f32
    %151 = vector.broadcast %cst_72 : f32 to vector<2x256xf32>
    %152 = arith.select %12, %150, %151 : vector<2x256xi1>, vector<2x256xf32>
    %c3_73 = arith.constant 3 : index
    %c4_74 = arith.constant 4 : index
    %153 = memref.load %arg1[%c3_73, %c4_74] : memref<5x5xf32, #tpu.memory_space<smem>>
    %154 = vector.broadcast %153 : f32 to vector<2x256xf32>
    %155 = arith.mulf %154, %152 : vector<2x256xf32>
    %156 = arith.addf %149, %155 : vector<2x256xf32>
    %c224_i32 = arith.constant 224 : i32
    %157 = tpu.dynamic_rotate %0 by %c224_i32 dim 1 : vector<2x256xf32>, i32 -> vector<2x256xf32>
    %c224_i32_75 = arith.constant 224 : i32
    %158 = vector.broadcast %c224_i32_75 : i32 to vector<2x256xi32>
    %159 = arith.cmpi slt, %1, %158 : vector<2x256xi32>
    %cst_76 = arith.constant 0.000000e+00 : f32
    %160 = vector.broadcast %cst_76 : f32 to vector<2x256xf32>
    %161 = arith.select %159, %157, %160 : vector<2x256xi1>, vector<2x256xf32>
    %c2_i32_77 = arith.constant 2 : i32
    %162 = tpu.dynamic_rotate %161 by %c2_i32_77 dim 1 : vector<2x256xf32>, i32 -> vector<2x256xf32>
    %cst_78 = arith.constant 0.000000e+00 : f32
    %163 = vector.broadcast %cst_78 : f32 to vector<2x256xf32>
    %164 = arith.select %6, %162, %163 : vector<2x256xi1>, vector<2x256xf32>
    %c4_79 = arith.constant 4 : index
    %c0_80 = arith.constant 0 : index
    %165 = memref.load %arg1[%c4_79, %c0_80] : memref<5x5xf32, #tpu.memory_space<smem>>
    %166 = vector.broadcast %165 : f32 to vector<2x256xf32>
    %167 = arith.mulf %166, %164 : vector<2x256xf32>
    %168 = arith.addf %156, %167 : vector<2x256xf32>
    %c1_i32_81 = arith.constant 1 : i32
    %169 = tpu.dynamic_rotate %161 by %c1_i32_81 dim 1 : vector<2x256xf32>, i32 -> vector<2x256xf32>
    %cst_82 = arith.constant 0.000000e+00 : f32
    %170 = vector.broadcast %cst_82 : f32 to vector<2x256xf32>
    %171 = arith.select %8, %169, %170 : vector<2x256xi1>, vector<2x256xf32>
    %c4_83 = arith.constant 4 : index
    %c1_84 = arith.constant 1 : index
    %172 = memref.load %arg1[%c4_83, %c1_84] : memref<5x5xf32, #tpu.memory_space<smem>>
    %173 = vector.broadcast %172 : f32 to vector<2x256xf32>
    %174 = arith.mulf %173, %171 : vector<2x256xf32>
    %175 = arith.addf %168, %174 : vector<2x256xf32>
    %c4_85 = arith.constant 4 : index
    %c2_86 = arith.constant 2 : index
    %176 = memref.load %arg1[%c4_85, %c2_86] : memref<5x5xf32, #tpu.memory_space<smem>>
    %177 = vector.broadcast %176 : f32 to vector<2x256xf32>
    %178 = arith.mulf %177, %161 : vector<2x256xf32>
    %179 = arith.addf %175, %178 : vector<2x256xf32>
    %c255_i32_87 = arith.constant 255 : i32
    %180 = tpu.dynamic_rotate %161 by %c255_i32_87 dim 1 : vector<2x256xf32>, i32 -> vector<2x256xf32>
    %cst_88 = arith.constant 0.000000e+00 : f32
    %181 = vector.broadcast %cst_88 : f32 to vector<2x256xf32>
    %182 = arith.select %10, %180, %181 : vector<2x256xi1>, vector<2x256xf32>
    %c4_89 = arith.constant 4 : index
    %c3_90 = arith.constant 3 : index
    %183 = memref.load %arg1[%c4_89, %c3_90] : memref<5x5xf32, #tpu.memory_space<smem>>
    %184 = vector.broadcast %183 : f32 to vector<2x256xf32>
    %185 = arith.mulf %184, %182 : vector<2x256xf32>
    %186 = arith.addf %179, %185 : vector<2x256xf32>
    %c254_i32_91 = arith.constant 254 : i32
    %187 = tpu.dynamic_rotate %161 by %c254_i32_91 dim 1 : vector<2x256xf32>, i32 -> vector<2x256xf32>
    %cst_92 = arith.constant 0.000000e+00 : f32
    %188 = vector.broadcast %cst_92 : f32 to vector<2x256xf32>
    %189 = arith.select %12, %187, %188 : vector<2x256xi1>, vector<2x256xf32>
    %c4_93 = arith.constant 4 : index
    %c4_94 = arith.constant 4 : index
    %190 = memref.load %arg1[%c4_93, %c4_94] : memref<5x5xf32, #tpu.memory_space<smem>>
    %191 = vector.broadcast %190 : f32 to vector<2x256xf32>
    %192 = arith.mulf %191, %189 : vector<2x256xf32>
    %193 = arith.addf %186, %192 : vector<2x256xf32>
    %cst_95 = arith.constant 0.000000e+00 : f32
    %cst_96 = arith.constant 1.000000e+00 : f32
    %194 = vector.broadcast %cst_95 : f32 to vector<2x256xf32>
    %195 = arith.maximumf %194, %193 : vector<2x256xf32>
    %196 = vector.broadcast %cst_96 : f32 to vector<2x256xf32>
    %197 = arith.minimumf %196, %195 : vector<2x256xf32>
    %cst_97 = arith.constant 5.000000e-01 : f32
    %198 = vector.broadcast %cst_97 : f32 to vector<2x256xf32>
    %199 = arith.mulf %197, %198 : vector<2x256xf32>
    %cst_98 = arith.constant 5.000000e-01 : f32
    %200 = vector.broadcast %cst_98 : f32 to vector<2x256xf32>
    %201 = arith.addf %199, %200 : vector<2x256xf32>
    %c0_99 = arith.constant 0 : index
    %c0_100 = arith.constant 0 : index
    %202 = vector.load %arg4[%c0_99, %c0_100] : memref<2x256xf32, #tpu.memory_space<vmem>>, vector<2x256xf32>
    tpu.vector_store %arg4[%c0_99, %c0_100], %201 {strides = array<i32>} : memref<2x256xf32, #tpu.memory_space<vmem>>, vector<2x256xf32>,
    return
  }
  func.func @transform_0(%arg0: i32) -> (i32, i32) {
    %c0_i32 = arith.constant 0 : i32
    %c0_i32_0 = arith.constant 0 : i32
    %c0_i32_1 = arith.constant 0 : i32
    return %c0_i32, %c0_i32_0 : i32, i32
  }
  func.func @transform_1(%arg0: i32) -> (i32, i32) {
    %c0_i32 = arith.constant 0 : i32
    %c0_i32_0 = arith.constant 0 : i32
    %c0_i32_1 = arith.constant 0 : i32
    return %c0_i32, %c0_i32_0 : i32, i32
  }
  func.func @transform_2(%arg0: i32) -> (i32, i32) {
    %c0_i32 = arith.constant 0 : i32
    %c0_i32_0 = arith.constant 0 : i32
    return %arg0, %c0_i32 : i32, i32
  }
  func.func @transform_3(%arg0: i32) -> (i32, i32) {
    %c0_i32 = arith.constant 0 : i32
    %c0_i32_0 = arith.constant 0 : i32
    return %arg0, %c0_i32 : i32, i32
  }
}

</mosaic_0001>

<bundles_post_ra>
// kernel: conv_mask_2d_trainable.1
= control target key start
LH: loop header
LB: loop body
LE: loop exit
PB: predicated region body
PF: predicated region fallthrough
CT: control target
= control target key end

     0   :  { %8 = vsyncpa [#allocation3], 0  ;;  %s513_s15 = smov [#allocation2]   ;;  %s951_s0 = inlined_call_operand.vmem [shape: f32[5,5], index: 0, kind: input, shape index: {}]   ;;  %s952_s1 = inlined_call_operand.vmem [shape: s32[1,256], index: 1, kind: input, shape index: {}]   ;;  %s953_s2 = inlined_call_operand.vmem [shape: f32[2,256], index: 2, kind: input, shape index: {}]   ;;  %s954_s3 = inlined_call_operand.vmem [shape: f32[2,256], index: 3, kind: output, shape index: {}]  }
   0x1   :  { %s14_s14 = sshll.u32 %s951_s0, 4  ;;  %s15_s14 = int_to_ptr.vmem [resolvable:$true] %s14_s14 }
   0x2   :  { %17 = dma.vmem_to_smem %s15_s14, 128, %s513_s15, [#allocation3]  }
   0x3   :  { %511 = dma.done.wait [#allocation3], 128  }
   0x4   :  { %512 = vsyncadd [#allocation3], 4294967168 }
   0x5   :  { %26 = sfence }
   0x6   :  { %v27_v0 = vld [vmem:[%s953_s2] sm:$0xf]  ;;  %s514_s18 = smov 32   ;;  %s515_s0 = smov 16   ;;  %v28_v21 = vlaneseq }
   0x7   :  { %43 = vst [vmem:[#allocation1] ss:$4 sm:$0xff] %v27_v0  ;;  %s477_s19 = sld [smem:[#allocation2 + $0x102]]  ;;  %s516_s20 = smov 2  }
   0x8   :  { %s517_s2 = smov 1   ;;  %s518_s21 = smov 127   ;;  %v560_v23 = vand.u32 127, %v28_v21 }
   0x9   :  { %s519_s22 = smov 126   ;;  %s520_s23 = smov 112  }
   0xa   :  { %s521_s24 = smov 96   ;;  %vm52_vm0 = vcmp.lt.s32.totalorder %v560_v23, 32  ;;  %vm55_vm1 = vcmp.ge.s32.totalorder %v560_v23, 32  ;;  %vm63_vm2 = vcmp.lt.s32.totalorder %v560_v23, 2  ;;  %vm134_vm3 = vcmp.lt.s32.totalorder %v560_v23, 16  ;;  %s687_s25 = sld [smem:[#allocation2 + $0x2]] }
   0xb   :  { %vm78_vm4 = vcmp.lt.s32.totalorder %v560_v23, 1  ;;  %vm137_vm5 = vcmp.ge.s32.totalorder %v560_v23, 16  ;;  %vm99_vm6 = vcmp.lt.s32.totalorder %v560_v23, 127  ;;  %vm114_vm7 = vcmp.lt.s32.totalorder %v560_v23, 126  ;;  %s691_s26 = sld [smem:[#allocation2]] }
   0xc   :  { %vm299_vm8 = vcmp.lt.s32.totalorder %v560_v23, 112  ;;  %v30_v52 = vadd.s32 128, %v560_v23  ;;  %vm377_vm10 = vcmp.lt.s32.totalorder %v560_v23, 96  ;;  %s696_s29 = sld [smem:[#allocation2 + $0x1]] }
   0xd   :  { %v242_v7 = vstv %s477_s19  ;;  %s702_s30 = sld [smem:[#allocation2 + $0x3]] }
   0xe   :  { %v44_v1 = vld.sshfl [vmem:[#allocation1] sm:$0xff pattern:$0x73625140]  ;;  %v45_v2 = vld.sshfl [vmem:[#allocation1 + $0x8] sm:$0xff pattern:$0x73625140]  ;;  %v243_v8 = vmul.f32 %v242_v7, %v27_v0 }
   0xf   :  { %48 = vrot.lane.b32.xlu0 %v44_v1, %s514_s18  ;;  %125 = vst [vmem:[#allocation1] ss:$4 sm:$0xff] %v27_v0  ;;  %vm303_vm9 = vcmp.lt.s32.totalorder %v30_v52, 240  ;;  %vm381_vm11 = vcmp.lt.s32.totalorder %v30_v52, 224  ;;  %s721_s4 = sld [smem:[#allocation2 + $0x80]] }
  0x10   :  { %s471_s5 = sld [smem:[#allocation2 + $0x81]] }
  0x11   :  { %s472_s6 = sld [smem:[#allocation2 + $0x82]] }
  0x12   :  { %s770_s7 = sld [smem:[#allocation2 + $0x83]] }
  0x13   :  { %s772_s8 = sld [smem:[#allocation2 + $0x100]] }
  0x14   :  { %s774_s9 = sld [smem:[#allocation2 + $0x84]] }
  0x15   :  { %s776_s10 = sld [smem:[#allocation2 + $0x101]] }
  0x16   :  { %v126_v3 = vld.sshfl [vmem:[#allocation1] sm:$0xff pattern:$0x73625140]  ;;  %v127_v4 = vld.sshfl [vmem:[#allocation1 + $0x8] sm:$0xff pattern:$0x73625140] }
  0x17   :  { %50 = vrot.lane.b32.xlu0 %v45_v2, %s514_s18  ;;  %130 = vrot.lane.b32.xlu1 %v126_v3, %s515_s0  ;;  %203 = vst [vmem:[#allocation1] ss:$4 sm:$0xff] %v27_v0  ;;  %v31_v2 = vld [vmem:[%s952_s1] sm:$0x3]  ;;  %s713_s1 = sld [smem:[#allocation2 + $0x4]] }
  0x18   :  { %132 = vrot.lane.b32.xlu2 %v127_v4, %s515_s0  ;;  %s796_s11 = sld [smem:[#allocation2 + $0x103]] }
  0x19   :  { %s805_s12 = sld [smem:[#allocation2 + $0x104]] }
  0x1a   :  { %s808_s13 = sld [smem:[#allocation2 + $0x182]] }
  0x1b   :  { %s828_s14 = sld [smem:[#allocation2 + $0x180]] }
  0x1c   :  { %s830_s15 = sld [smem:[#allocation2 + $0x181]] }
  0x1d   :  { %s846_s16 = sld [smem:[#allocation2 + $0x183]] }
  0x1e   :  { %v205_v5 = vld.sshfl [vmem:[#allocation1 + $0x8] sm:$0xff pattern:$0x73625140]  ;;  %v204_v6 = vld.sshfl [vmem:[#allocation1] sm:$0xff pattern:$0x73625140] }
  0x1f   :  { %210 = vrot.lane.b32.xlu1 %v205_v5, %s516_s20  ;;  %208 = vrot.lane.b32.xlu0 %v204_v6, %s516_s20  ;;  %222 = vst [vmem:[#allocation1] ss:$4 sm:$0xff] %v27_v0  ;;  %v698_v5 = vperm.slane %v31_v2, 0  ;;  %v700_v6 = vperm.slane %v31_v2, 1  ;;  %s855_s17 = sld [smem:[#allocation2 + $0x184]] }
  0x20   :  { %s879_s18 = sld [smem:[#allocation2 + $0x200]] }
  0x21   :  { %vm34_vm12 = vcmp.ge.s32.totalorder %v698_v5, 2  ;;  %vm35_vm13 = vcmp.ge.s32.totalorder %v700_v6, 2  ;;  %vm36_vm14 = vcmp.ge.s32.totalorder %v698_v5, 1  ;;  %vm37_vm15 = vcmp.ge.s32.totalorder %v700_v6, 1  ;;  %s895_s0 = sld [smem:[#allocation2 + $0x201]] }
  0x22   :  { %s905_s19 = sld [smem:[#allocation2 + $0x202]] }
  0x26   :  { %v224_v9 = vld.sshfl [vmem:[#allocation1 + $0x8] sm:$0xff pattern:$0x73625140]  ;;  %v223_v10 = vld.sshfl [vmem:[#allocation1] sm:$0xff pattern:$0x73625140] }
  0x27   :  { %229 = vrot.lane.b32.xlu0 %v224_v9, %s517_s2  ;;  %245 = vst [vmem:[#allocation1] ss:$4 sm:$0xff] %v243_v8  ;;  %227 = vrot.lane.b32.xlu2 %v223_v10, %s517_s2  ;;  %v90_v9 = vstv %s687_s25  ;;  %v69_v10 = vstv %s691_s26 }
  0x2e   :  { %v552_v11 = vld.sshfl [vmem:[#allocation1] sm:$0xff pattern:$0x73625140]  ;;  %v554_v12 = vld.sshfl [vmem:[#allocation1 + $0x8] sm:$0xff pattern:$0x73625140] }
  0x2f   :  { %252 = vst [vmem:[#allocation1] ss:$4 sm:$0xff] %v27_v0 }
  0x36   :  { %v253_v13 = vld.sshfl [vmem:[#allocation1] sm:$0xff pattern:$0x73625140]  ;;  %v254_v14 = vld.sshfl [vmem:[#allocation1 + $0x8] sm:$0xff pattern:$0x73625140] }
  0x37   :  { %257 = vrot.lane.b32.xlu1 %v253_v13, %s518_s21  ;;  %271 = vst [vmem:[#allocation1] ss:$4 sm:$0xff] %v27_v0  ;;  %259 = vrot.lane.b32.xlu2 %v254_v14, %s518_s21 }
  0x3e   :  { %v273_v15 = vld.sshfl [vmem:[#allocation1 + $0x8] sm:$0xff pattern:$0x73625140]  ;;  %v272_v16 = vld.sshfl [vmem:[#allocation1] sm:$0xff pattern:$0x73625140] }
  0x3f   :  { %278 = vrot.lane.b32.xlu1 %v273_v15, %s519_s22  ;;  %276 = vrot.lane.b32.xlu0 %v272_v16, %s519_s22  ;;  %290 = vst [vmem:[#allocation1] ss:$4 sm:$0xff] %v27_v0  ;;  %v84_v15 = vstv %s696_s29 }
  0x46   :  { %v291_v17 = vld.sshfl [vmem:[#allocation1] sm:$0xff pattern:$0x73625140]  ;;  %v292_v18 = vld.sshfl [vmem:[#allocation1 + $0x8] sm:$0xff pattern:$0x73625140] }
  0x47   :  { %295 = vrot.lane.b32.xlu1 %v291_v17, %s520_s23  ;;  %368 = vst [vmem:[#allocation1] ss:$4 sm:$0xff] %v27_v0  ;;  %297 = vrot.lane.b32.xlu2 %v292_v18, %s520_s23 }
  0x4e   :  { %v369_v19 = vld.sshfl [vmem:[#allocation1] sm:$0xff pattern:$0x73625140]  ;;  %v370_v20 = vld.sshfl [vmem:[#allocation1 + $0x8] sm:$0xff pattern:$0x73625140] }
  0x4f   :  { %373 = vrot.lane.b32.xlu1 %v369_v19, %s521_s24  ;;  %375 = vrot.lane.b32.xlu2 %v370_v20, %s521_s24 }
  0x72   :  { %v133_v28 = vpop.permute.xlu2 %132 }
  0x81   :  { %v49_v22 = vpop.permute.xlu0 %48  ;;  %v228_v35 = vpop.permute.xlu2 %227 }
  0x89   :  { %v51_v24 = vpop.permute.xlu0 %50  ;;  %v131_v25 = vpop.permute.xlu1 %130 }
  0x8a   :  { %v563_v26 = vsel %vm52_vm0, %v49_v22, %v51_v24  ;;  %v54_v27 = vsel %vm52_vm0, %v51_v24, %v49_v22  ;;  %v591_v34 = vsel %vm134_vm3, %v131_v25, %v133_v28  ;;  %v136_v39 = vsel %vm134_vm3, %v133_v28, %v131_v25 }
  0x8b   :  { %97 = vrot.lane.b32.xlu0 %v563_v26, %s518_s21  ;;  %61 = vrot.lane.b32.xlu2 %v563_v26, %s516_s20  ;;  %v573_v31 = vsel %vm55_vm1, %v54_v27, 0.0  ;;  %v608_v40 = vsel %vm137_vm5, %v136_v39, 0.0  ;;  %vm38_vm0 = vcmp.lt.s32.totalorder %v698_v5, 15  ;;  %vm39_vm1 = vcmp.lt.s32.totalorder %v700_v6, 15 }
  0x8c   :  { %76 = vrot.lane.b32.xlu1 %v563_v26, %s517_s2  ;;  %vm40_vm3 = vcmp.lt.s32.totalorder %v698_v5, 14  ;;  %vm41_vm5 = vcmp.lt.s32.totalorder %v700_v6, 14 }
  0x91   :  { %v211_v29 = vpop.permute.xlu1 %210  ;;  %v209_v30 = vpop.permute.xlu0 %208 }
  0x92   :  { %v577_v32 = vsel %vm63_vm2, %v209_v30, %v211_v29  ;;  %v581_v33 = vsel %vm63_vm2, %v211_v29, %v209_v30  ;;  %v260_v41 = vpop.permute.xlu2 %259 }
  0x93   :  { %112 = vrot.lane.b32.xlu0 %v563_v26, %s519_s22  ;;  %95 = vrot.lane.b32.xlu2 %v573_v31, %s518_s21 }
  0x94   :  { %59 = vrot.lane.b32.xlu1 %v573_v31, %s516_s20 }
  0x99   :  { %v230_v36 = vpop.permute.xlu0 %229 }
  0x9a   :  { %v595_v37 = vsel %vm78_vm4, %v228_v35, %v230_v36  ;;  %v599_v38 = vsel %vm78_vm4, %v230_v36, %v228_v35  ;;  %v105_v35 = vstv %s702_s30 }
  0x9b   :  { %74 = vrot.lane.b32.xlu0 %v573_v31, %s517_s2  ;;  %143 = vrot.lane.b32.xlu2 %v591_v34, %s516_s20 }
  0x9c   :  { %157 = vrot.lane.b32.xlu1 %v591_v34, %s517_s2 }
  0xa1   :  { %v298_v49 = vpop.permute.xlu2 %297 }
  0xa3   :  { %110 = vrot.lane.b32.xlu0 %v573_v31, %s519_s22  ;;  %191 = vrot.lane.b32.xlu2 %v591_v34, %s519_s22 }
  0xa4   :  { %141 = vrot.lane.b32.xlu1 %v608_v40, %s516_s20 }
  0xa9   :  { %v258_v42 = vpop.permute.xlu1 %257  ;;  %v376_v55 = vpop.permute.xlu2 %375 }
  0xaa   :  { %v619_v43 = vsel %vm99_vm6, %v258_v42, %v260_v41  ;;  %v623_v44 = vsel %vm99_vm6, %v260_v41, %v258_v42  ;;  %v91_v41 = vmul.f32 %v90_v9, %v573_v31  ;;  %v92_v42 = vmul.f32 %v90_v9, %v563_v26 }
  0xab   :  { %177 = vrot.lane.b32.xlu0 %v591_v34, %s518_s21  ;;  %175 = vrot.lane.b32.xlu2 %v608_v40, %s518_s21 }
  0xac   :  { %189 = vrot.lane.b32.xlu1 %v608_v40, %s519_s22 }
  0xb1   :  { %v279_v45 = vpop.permute.xlu1 %278  ;;  %v277_v46 = vpop.permute.xlu0 %276 }
  0xb2   :  { %v634_v47 = vsel %vm114_vm7, %v277_v46, %v279_v45  ;;  %v638_v48 = vsel %vm114_vm7, %v279_v45, %v277_v46 }
  0xb3   :  { %155 = vrot.lane.b32.xlu0 %v608_v40, %s517_s2 }
  0xb9   :  { %v296_v50 = vpop.permute.xlu1 %295 }
  0xba   :  { %v643_v51 = vsel %vm299_vm8, %v296_v50, %v298_v49  ;;  %v301_v53 = vsel %vm299_vm8, %v298_v49, %v296_v50 }
  0xbb   :  { %340 = vrot.lane.b32.xlu0 %v643_v51, %s518_s21  ;;  %306 = vrot.lane.b32.xlu2 %v643_v51, %s516_s20  ;;  %v652_v54 = vsel %vm303_vm9, %v301_v53, 0.0 }
  0xbc   :  { %320 = vrot.lane.b32.xlu1 %v643_v51, %s517_s2 }
  0xc1   :  { %v374_v56 = vpop.permute.xlu1 %373 }
  0xc2   :  { %v661_v57 = vsel %vm377_vm10, %v374_v56, %v376_v55  ;;  %v379_v58 = vsel %vm377_vm10, %v376_v55, %v374_v56  ;;  %v120_v55 = vstv %s713_s1 }
  0xc3   :  { %308 = vrot.lane.b32.xlu0 %v652_v54, %s516_s20  ;;  %354 = vrot.lane.b32.xlu2 %v643_v51, %s519_s22  ;;  %v669_v59 = vsel %vm381_vm11, %v379_v58, 0.0  ;;  %v150_v58 = vstv %s721_s4 }
  0xc4   :  { %342 = vrot.lane.b32.xlu1 %v652_v54, %s518_s21 }
  0xcb   :  { %356 = vrot.lane.b32.xlu0 %v652_v54, %s519_s22  ;;  %322 = vrot.lane.b32.xlu2 %v652_v54, %s517_s2 }
  0xcc   :  { %384 = vrot.lane.b32.xlu1 %v661_v57, %s516_s20 }
  0xd3   :  { %418 = vrot.lane.b32.xlu2 %v661_v57, %s518_s21  ;;  %398 = vrot.lane.b32.xlu0 %v661_v57, %s517_s2 }
  0xd4   :  { %400 = vrot.lane.b32.xlu1 %v669_v59, %s517_s2  ;;  %s915_s2 = sld [smem:[#allocation2 + $0x204]] }
  0xdb   :  { %386 = vrot.lane.b32.xlu2 %v669_v59, %s516_s20  ;;  %420 = vrot.lane.b32.xlu0 %v669_v59, %s518_s21  ;;  %s912_s20 = sld [smem:[#allocation2 + $0x203]] }
  0xdc   :  { %432 = vrot.lane.b32.xlu1 %v661_v57, %s519_s22 }
  0xe3   :  { %434 = vrot.lane.b32.xlu2 %v669_v59, %s519_s22 }
  0xe5   :  { %v62_v60 = vpop.permute.xlu2 %61 }
  0xed   :  { %v96_v61 = vpop.permute.xlu2 %95 }
  0xf5   :  { %v685_v62 = vpop.permute.xlu2 %143 }
  0xfd   :  { %v98_v63 = vpop.permute.xlu0 %97  ;;  %v689_v1 = vpop.permute.xlu2 %191 }
  0xfe   :  { %v77_v0 = vpop.permute.xlu1 %76  ;;  %v100_v17 = vsel %vm99_vm6, %v96_v61, %v98_v63  ;;  %v101_v18 = vsel %vm99_vm6, %v98_v63, %v96_v61 }
  0xff   :  { %v102_v36 = vsel %vm38_vm0, %v100_v17, 0.0  ;;  %v103_v39 = vsel %vm39_vm1, %v101_v18, 0.0 }
 0x100   :  { %v106_v49 = vmul.f32 %v105_v35, %v102_v36  ;;  %v107_v50 = vmul.f32 %v105_v35, %v103_v39  ;;  %v170_v36 = vstv %s472_s6 }
 0x105   :  { %v113_v3 = vpop.permute.xlu0 %112  ;;  %v176_v19 = vpop.permute.xlu2 %175 }
 0x106   :  { %v60_v4 = vpop.permute.xlu1 %59 }
 0x107   :  { %v64_v7 = vsel %vm63_vm2, %v60_v4, %v62_v60  ;;  %v65_v8 = vsel %vm63_vm2, %v62_v60, %v60_v4 }
 0x108   :  { %v66_v13 = vsel %vm34_vm12, %v65_v8, 0.0  ;;  %v67_v14 = vsel %vm35_vm13, %v64_v7, 0.0 }
 0x109   :  { %v70_v27 = vmul.f32 %v69_v10, %v66_v13  ;;  %v71_v28 = vmul.f32 %v69_v10, %v67_v14 }
 0x10d   :  { %v75_v16 = vpop.permute.xlu0 %74 }
 0x10e   :  { %v79_v20 = vsel %vm78_vm4, %v75_v16, %v77_v0  ;;  %v80_v21 = vsel %vm78_vm4, %v77_v0, %v75_v16  ;;  %v158_v22 = vpop.permute.xlu1 %157 }
 0x10f   :  { %v81_v24 = vsel %vm36_vm14, %v80_v21, 0.0  ;;  %v82_v25 = vsel %vm37_vm15, %v79_v20, 0.0 }
 0x110   :  { %v85_v29 = vmul.f32 %v84_v15, %v81_v24  ;;  %v86_v30 = vmul.f32 %v84_v15, %v82_v25  ;;  %v164_v25 = vstv %s471_s5 }
 0x112   :  { %v87_v45 = vadd.f32 %v85_v29, %v70_v27  ;;  %v88_v46 = vadd.f32 %v86_v30, %v71_v28 }
 0x114   :  { %v93_v52 = vadd.f32 %v91_v41, %v87_v45  ;;  %v94_v53 = vadd.f32 %v92_v42, %v88_v46 }
 0x115   :  { %v111_v56 = vpop.permute.xlu0 %110  ;;  %v752_v63 = vpop.permute.xlu2 %306 }
 0x116   :  { %v108_v60 = vadd.f32 %v106_v49, %v93_v52  ;;  %v109_v61 = vadd.f32 %v107_v50, %v94_v53  ;;  %v115_v31 = vsel %vm114_vm7, %v111_v56, %v113_v3  ;;  %v116_v26 = vsel %vm114_vm7, %v113_v3, %v111_v56  ;;  %v142_v0 = vpop.permute.xlu1 %141 }
 0x117   :  { %v117_v2 = vsel %vm40_vm3, %v115_v31, 0.0  ;;  %v118_v4 = vsel %vm41_vm5, %v116_v26, 0.0  ;;  %v145_v7 = vsel %vm63_vm2, %v142_v0, %v685_v62  ;;  %v146_v8 = vsel %vm63_vm2, %v685_v62, %v142_v0 }
 0x118   :  { %v121_v9 = vmul.f32 %v120_v55, %v117_v2  ;;  %v122_v10 = vmul.f32 %v120_v55, %v118_v4  ;;  %v147_v3 = vsel %vm34_vm12, %v146_v8, 0.0  ;;  %v148_v13 = vsel %vm35_vm13, %v145_v7, 0.0 }
 0x119   :  { %v151_v16 = vmul.f32 %v150_v58, %v147_v3  ;;  %v152_v17 = vmul.f32 %v150_v58, %v148_v13  ;;  %v171_v52 = vmul.f32 %v170_v36, %v608_v40  ;;  %v172_v53 = vmul.f32 %v170_v36, %v591_v34 }
 0x11a   :  { %v123_v14 = vadd.f32 %v121_v9, %v108_v60  ;;  %v124_v15 = vadd.f32 %v122_v10, %v109_v61  ;;  %v217_v58 = vstv %s772_s8  ;;  %v198_v60 = vstv %s774_s9 }
 0x11b   :  { %v214_v2 = vsel %vm34_vm12, %v581_v33, 0.0  ;;  %v215_v4 = vsel %vm35_vm13, %v577_v32, 0.0  ;;  %v236_v7 = vstv %s776_s10  ;;  %v233_v8 = vsel %vm36_vm14, %v599_v38, 0.0 }
 0x11c   :  { %v153_v18 = vadd.f32 %v151_v16, %v123_v14  ;;  %v154_v20 = vadd.f32 %v152_v17, %v124_v15  ;;  %v234_v33 = vsel %vm37_vm15, %v595_v37, 0.0  ;;  %v218_v32 = vmul.f32 %v217_v58, %v214_v2 }
 0x11d   :  { %v178_v21 = vpop.permute.xlu0 %177  ;;  %v768_v24 = vpop.permute.xlu2 %354  ;;  %v219_v16 = vmul.f32 %v217_v58, %v215_v4  ;;  %v237_v38 = vmul.f32 %v236_v7, %v233_v8 }
 0x11e   :  { %v190_v62 = vpop.permute.xlu1 %189  ;;  %v179_v28 = vsel %vm99_vm6, %v176_v19, %v178_v21  ;;  %v180_v29 = vsel %vm99_vm6, %v178_v21, %v176_v19  ;;  %v263_v21 = vsel %vm38_vm0, %v619_v43, 0.0 }
 0x11f   :  { %v193_v42 = vsel %vm114_vm7, %v190_v62, %v689_v1  ;;  %v194_v19 = vsel %vm114_vm7, %v689_v1, %v190_v62  ;;  %v181_v49 = vsel %vm38_vm0, %v179_v28, 0.0  ;;  %v182_v50 = vsel %vm39_vm1, %v180_v29, 0.0 }
 0x120   :  { %v195_v61 = vsel %vm40_vm3, %v193_v42, 0.0  ;;  %v196_v31 = vsel %vm41_vm5, %v194_v19, 0.0  ;;  %v238_v62 = vmul.f32 %v236_v7, %v234_v33  ;;  %v285_v28 = vstv %s805_s12 }
 0x121   :  { %v199_v10 = vmul.f32 %v198_v60, %v195_v61  ;;  %v200_v3 = vmul.f32 %v198_v60, %v196_v31  ;;  %v335_v29 = vstv %s808_s13 }
 0x122   :  { %v337_v2 = vmul.f32 %v335_v29, %v652_v54 }
 0x125   :  { %v156_v27 = vpop.permute.xlu0 %155  ;;  %v323_v56 = vpop.permute.xlu2 %322 }
 0x126   :  { %v159_v30 = vsel %vm78_vm4, %v156_v27, %v158_v22  ;;  %v160_v35 = vsel %vm78_vm4, %v158_v22, %v156_v27  ;;  %v184_v22 = vstv %s770_s7 }
 0x127   :  { %v161_v39 = vsel %vm36_vm14, %v160_v35, 0.0  ;;  %v162_v41 = vsel %vm37_vm15, %v159_v30, 0.0  ;;  %v185_v26 = vmul.f32 %v184_v22, %v181_v49  ;;  %v186_v40 = vmul.f32 %v184_v22, %v182_v50 }
 0x128   :  { %v165_v45 = vmul.f32 %v164_v25, %v161_v39  ;;  %v166_v46 = vmul.f32 %v164_v25, %v162_v41  ;;  %v264_v25 = vsel %vm39_vm1, %v623_v44, 0.0  ;;  %v282_v35 = vsel %vm40_vm3, %v634_v47, 0.0 }
 0x129   :  { %v283_v44 = vsel %vm41_vm5, %v638_v48, 0.0  ;;  %v286_v50 = vmul.f32 %v285_v28, %v282_v35 }
 0x12a   :  { %v167_v55 = vadd.f32 %v165_v45, %v153_v18  ;;  %v168_v1 = vadd.f32 %v166_v46, %v154_v20  ;;  %v266_v20 = vstv %s796_s11 }
 0x12b   :  { %v267_v30 = vmul.f32 %v266_v20, %v263_v21  ;;  %v268_v43 = vmul.f32 %v266_v20, %v264_v25 }
 0x12c   :  { %v173_v0 = vadd.f32 %v171_v52, %v167_v55  ;;  %v174_v34 = vadd.f32 %v172_v53, %v168_v1  ;;  %v315_v52 = vstv %s828_s14  ;;  %v329_v1 = vstv %s830_s15 }
 0x12d   :  { %v341_v9 = vpop.permute.xlu0 %340  ;;  %v844_v36 = vpop.permute.xlu2 %418 }
 0x12e   :  { %v187_v13 = vadd.f32 %v185_v26, %v173_v0  ;;  %v188_v14 = vadd.f32 %v186_v40, %v174_v34  ;;  %v321_v15 = vpop.permute.xlu1 %320  ;;  %v336_v34 = vmul.f32 %v335_v29, %v643_v51 }
 0x12f   :  { %v324_v42 = vsel %vm78_vm4, %v321_v15, %v323_v56  ;;  %v325_v19 = vsel %vm78_vm4, %v323_v56, %v321_v15 }
 0x130   :  { %v201_v17 = vadd.f32 %v199_v10, %v187_v13  ;;  %v202_v18 = vadd.f32 %v200_v3, %v188_v14  ;;  %v326_v58 = vsel %vm36_vm14, %v325_v19, 0.0  ;;  %v349_v3 = vstv %s846_s16 }
 0x131   :  { %v330_v4 = vmul.f32 %v329_v1, %v326_v58  ;;  %v363_v14 = vstv %s855_s17 }
 0x132   :  { %v220_v37 = vadd.f32 %v218_v32, %v201_v17  ;;  %v221_v27 = vadd.f32 %v219_v16, %v202_v18 }
 0x134   :  { %v239_v39 = vadd.f32 %v237_v38, %v220_v37  ;;  %v240_v41 = vadd.f32 %v238_v62, %v221_v27  ;;  %v393_v27 = vstv %s879_s18 }
 0x135   :  { %v309_v47 = vpop.permute.xlu0 %308  ;;  %v387_v16 = vpop.permute.xlu2 %386 }
 0x136   :  { %v250_v45 = vadd.f32 %v552_v11, %v239_v39  ;;  %v251_v46 = vadd.f32 %v554_v12, %v240_v41  ;;  %v310_v22 = vsel %vm63_vm2, %v752_v63, %v309_v47  ;;  %v311_v48 = vsel %vm63_vm2, %v309_v47, %v752_v63  ;;  %v343_v49 = vpop.permute.xlu1 %342 }
 0x137   :  { %v312_v53 = vsel %vm34_vm12, %v311_v48, 0.0  ;;  %v313_v55 = vsel %vm35_vm13, %v310_v22, 0.0  ;;  %v287_v11 = vmul.f32 %v285_v28, %v283_v44  ;;  %v327_v63 = vsel %vm37_vm15, %v324_v42, 0.0 }
 0x138   :  { %v269_v12 = vadd.f32 %v267_v30, %v250_v45  ;;  %v270_v56 = vadd.f32 %v268_v43, %v251_v46  ;;  %v344_v60 = vsel %vm99_vm6, %v341_v9, %v343_v49  ;;  %v345_v61 = vsel %vm99_vm6, %v343_v49, %v341_v9 }
 0x139   :  { %v316_v40 = vmul.f32 %v315_v52, %v312_v53  ;;  %v317_v0 = vmul.f32 %v315_v52, %v313_v55  ;;  %v331_v7 = vmul.f32 %v329_v1, %v327_v63  ;;  %v346_v13 = vsel %vm38_vm0, %v344_v60, 0.0 }
 0x13a   :  { %v288_v31 = vadd.f32 %v286_v50, %v269_v12  ;;  %v289_v26 = vadd.f32 %v287_v11, %v270_v56  ;;  %v347_v9 = vsel %vm39_vm1, %v345_v61, 0.0  ;;  %v407_v22 = vstv %s895_s0 }
 0x13b   :  { %v351_v37 = vmul.f32 %v349_v3, %v347_v9  ;;  %v413_v52 = vstv %s905_s19  ;;  %v427_v60 = vstv %s912_s20 }
 0x13c   :  { %v318_v8 = vadd.f32 %v316_v40, %v288_v31  ;;  %v319_v10 = vadd.f32 %v317_v0, %v289_v26  ;;  %v414_v12 = vmul.f32 %v413_v52, %v661_v57  ;;  %v415_v56 = vmul.f32 %v413_v52, %v669_v59 }
 0x13d   :  { %v357_v15 = vpop.permute.xlu0 %356  ;;  %v435_v40 = vpop.permute.xlu2 %434 }
 0x13e   :  { %v332_v33 = vadd.f32 %v330_v4, %v318_v8  ;;  %v333_v32 = vadd.f32 %v331_v7, %v319_v10  ;;  %v358_v51 = vsel %vm114_vm7, %v768_v24, %v357_v15  ;;  %v359_v54 = vsel %vm114_vm7, %v357_v15, %v768_v24  ;;  %v385_v17 = vpop.permute.xlu1 %384 }
 0x13f   :  { %v360_v18 = vsel %vm40_vm3, %v358_v51, 0.0  ;;  %v361_v38 = vsel %vm41_vm5, %v359_v54, 0.0  ;;  %v388_v20 = vsel %vm63_vm2, %v385_v17, %v387_v16  ;;  %v389_v21 = vsel %vm63_vm2, %v387_v16, %v385_v17 }
 0x140   :  { %v338_v62 = vadd.f32 %v336_v34, %v332_v33  ;;  %v339_v25 = vadd.f32 %v337_v2, %v333_v32  ;;  %v350_v24 = vmul.f32 %v349_v3, %v346_v13  ;;  %v390_v28 = vsel %vm34_vm12, %v389_v21, 0.0 }
 0x141   :  { %v391_v29 = vsel %vm35_vm13, %v388_v20, 0.0  ;;  %v364_v39 = vmul.f32 %v363_v14, %v360_v18  ;;  %v365_v41 = vmul.f32 %v363_v14, %v361_v38  ;;  %v394_v42 = vmul.f32 %v393_v27, %v390_v28 }
 0x142   :  { %v352_v30 = vadd.f32 %v350_v24, %v338_v62  ;;  %v353_v35 = vadd.f32 %v351_v37, %v339_v25  ;;  %v395_v19 = vmul.f32 %v393_v27, %v391_v29  ;;  %v441_v2 = vstv %s915_s2 }
 0x143   :  { %vm457_vm2 = vcmask 1041408  }
 0x144   :  { %v366_v43 = vadd.f32 %v364_v39, %v352_v30  ;;  %v367_v44 = vadd.f32 %v365_v41, %v353_v35 }
 0x145   :  { %v399_v47 = vpop.permute.xlu0 %398 }
 0x146   :  { %v396_v45 = vadd.f32 %v394_v42, %v366_v43  ;;  %v397_v46 = vadd.f32 %v395_v19, %v367_v44  ;;  %v401_v48 = vpop.permute.xlu1 %400 }
 0x147   :  { %v402_v49 = vsel %vm78_vm4, %v399_v47, %v401_v48  ;;  %v403_v50 = vsel %vm78_vm4, %v401_v48, %v399_v47 }
 0x148   :  { %v404_v53 = vsel %vm36_vm14, %v403_v50, 0.0  ;;  %v405_v55 = vsel %vm37_vm15, %v402_v49, 0.0 }
 0x149   :  { %v408_v11 = vmul.f32 %v407_v22, %v404_v53  ;;  %v409_v1 = vmul.f32 %v407_v22, %v405_v55 }
 0x14b   :  { %v410_v58 = vadd.f32 %v408_v11, %v396_v45  ;;  %v411_v63 = vadd.f32 %v409_v1, %v397_v46 }
 0x14d   :  { %v421_v61 = vpop.permute.xlu0 %420  ;;  %v416_v31 = vadd.f32 %v414_v12, %v410_v58  ;;  %v417_v26 = vadd.f32 %v415_v56, %v411_v63 }
 0x14e   :  { %v422_v0 = vsel %vm99_vm6, %v844_v36, %v421_v61  ;;  %v423_v34 = vsel %vm99_vm6, %v421_v61, %v844_v36  ;;  %v433_v4 = vpop.permute.xlu1 %432 }
 0x14f   :  { %v424_v57 = vsel %vm38_vm0, %v422_v0, 0.0  ;;  %v425_v59 = vsel %vm39_vm1, %v423_v34, 0.0  ;;  %v436_v7 = vsel %vm114_vm7, %v433_v4, %v435_v40  ;;  %v437_v8 = vsel %vm114_vm7, %v435_v40, %v433_v4 }
 0x150   :  { %v428_v10 = vmul.f32 %v427_v60, %v424_v57  ;;  %v429_v3 = vmul.f32 %v427_v60, %v425_v59  ;;  %v438_v13 = vsel %vm40_vm3, %v436_v7, 0.0  ;;  %v439_v36 = vsel %vm41_vm5, %v437_v8, 0.0 }
 0x151   :  { %v442_v15 = vmul.f32 %v441_v2, %v438_v13  ;;  %v443_v33 = vmul.f32 %v441_v2, %v439_v36 }
 0x152   :  { %v430_v9 = vadd.f32 %v428_v10, %v416_v31  ;;  %v431_v14 = vadd.f32 %v429_v3, %v417_v26 }
 0x154   :  { %v444_v32 = vadd.f32 %v442_v15, %v430_v9  ;;  %v445_v16 = vadd.f32 %v443_v33, %v431_v14 }
 0x156   :  { %v446_v51 = vmax.f32 %v444_v32, 0.0  ;;  %v447_v54 = vmax.f32 %v445_v16, 0.0 }
 0x158   :  { %v448_v17 = vmin.f32 %v446_v51, 1.0  ;;  %v449_v18 = vmin.f32 %v447_v54, 1.0 }
 0x15a   :  { %v450_v23 = vmul.f32 0.5, %v448_v17  ;;  %v451_v38 = vmul.f32 0.5, %v449_v18 }
 0x15c   :  { %v453_v20 = vadd.f32 0.5, %v451_v38  ;;  %v452_v21 = vadd.f32 0.5, %v450_v23 }
 0x15e   :  { %v456_v5 = vrot.slane %v453_v20, 6 }
 0x160   :  { %v458_v62 = vsel %vm457_vm2, %v452_v21, %v456_v5 }
 0x161   :  { %460 = vst [vmem:[%s954_s3] sm:$0xf] %v458_v62 }
 0x162   :  { %465 = vsyncpa [#allocation3], 1 }

</bundles_post_ra>
